<compile_context>
chip_gen: v7x
topology: tpu7x:2x2x1
jax: 0.10.0
libtpu: 0.0.40
codegen_flags: <defaults>
</compile_context>

<pallas_src>
import jax
import jax.numpy as jnp
from jax.experimental import pallas as pl
from jax.experimental.pallas import tpu as pltpu


def _round_up(x, m):
    return ((x + m - 1) // m) * m


def _choose_tm(M, gran, tm_max):
    """Pick an M-tile that divides M (no activation pad) and is a multiple of
    `gran`; prefer >= 2 blocks so both v7x TensorCores get work.  Returns None
    when no aligned divisor exists (caller pads M)."""
    if M <= tm_max:
        if M % (2 * gran) == 0:
            return M // 2          # two parallel blocks for megacore
        return M                   # single full-dim block (always legal)
    t = tm_max
    while t >= gran:
        if M % t == 0:
            return t
        t //= 2
    return None


def _largest_aligned_divisor(total, align, cap):
    """Largest multiple of `align` dividing `total` (total % align == 0), <= cap."""
    best = align
    d = align
    while d <= min(total, cap):
        if total % d == 0:
            best = d
        d += align
    return best


# ----------------------------------------------------------------------------
# Path A: resident-W GEMM.  Grid = (M/tm,); W and bias have constant block
# indices (DMA'd once, VMEM-resident), K and N are single blocks, so there is
# no reduction loop and no scratch accumulator.
# ----------------------------------------------------------------------------
def _resident_kernel(x_ref, w_ref, b_ref, o_ref):
    x_bf = x_ref[...].astype(jnp.bfloat16)      # no-op if x already bf16
    acc = jnp.dot(x_bf, w_ref[...], preferred_element_type=jnp.float32)
    o_ref[...] = (acc + b_ref[...]).astype(o_ref.dtype)


# ----------------------------------------------------------------------------
# Path B: streamed GEMM for large F*N.  Grid (M/tm, N/tn, K/tk), K innermost,
# f32 VMEM accumulator, bias added exactly once in the k==last finalize.
# ----------------------------------------------------------------------------
def _streamed_kernel(x_ref, w_ref, b_ref, o_ref, acc_ref):
    k = pl.program_id(2)

    @pl.when(k == 0)
    def _():
        acc_ref[...] = jnp.zeros_like(acc_ref)

    x_bf = x_ref[...].astype(jnp.bfloat16)
    acc_ref[...] += jnp.dot(x_bf, w_ref[...], preferred_element_type=jnp.float32)

    @pl.when(k == pl.num_programs(2) - 1)
    def _():
        o_ref[...] = (acc_ref[...] + b_ref[...]).astype(o_ref.dtype)


def _streamed_call(x_mf, w_bf, b_2d, out_dtype, gran, tm_max=512):
    M, F = x_mf.shape
    _, N = w_bf.shape
    x_bytes = jnp.dtype(x_mf.dtype).itemsize
    out_bytes = jnp.dtype(out_dtype).itemsize

    Kp = _round_up(F, 128)
    Np = _round_up(N, 128)
    tk = _largest_aligned_divisor(Kp, 128, 512)
    tn = _largest_aligned_divisor(Np, 128, 512)

    tm = _choose_tm(M, gran, tm_max)
    if tm is not None and tm < 128 and M > 4 * tm_max:
        tm = None                     # tiny divisor: one pad pass is cheaper
    if tm is None:
        tm = tm_max
    Mp = _round_up(M, tm)

    x_p = x_mf if (Mp == M and Kp == F) else jnp.pad(
        x_mf, ((0, Mp - M), (0, Kp - F)))
    w_p = w_bf if (Kp == F and Np == N) else jnp.pad(
        w_bf, ((0, Kp - F), (0, Np - N)))
    b_p = b_2d if Np == N else jnp.pad(b_2d, ((0, 0), (0, Np - N)))

    grid = (Mp // tm, Np // tn, Kp // tk)

    out_p = pl.pallas_call(
        _streamed_kernel,
        out_shape=jax.ShapeDtypeStruct((Mp, Np), out_dtype),
        grid_spec=pltpu.PrefetchScalarGridSpec(
            num_scalar_prefetch=0,
            grid=grid,
            in_specs=[
                pl.BlockSpec((tm, tk), lambda i, j, k: (i, k)),   # activations
                pl.BlockSpec((tk, tn), lambda i, j, k: (k, j)),   # weights
                pl.BlockSpec((1, tn), lambda i, j, k: (0, j)),    # bias
            ],
            out_specs=pl.BlockSpec((tm, tn), lambda i, j, k: (i, j)),
            scratch_shapes=[pltpu.VMEM((tm, tn), jnp.float32)],
        ),
        compiler_params=pltpu.CompilerParams(
            dimension_semantics=("parallel", "parallel", "arbitrary"),
        ),
        cost_estimate=pl.CostEstimate(
            flops=2 * Mp * Np * Kp,
            transcendentals=0,
            bytes_accessed=(Np // tn) * Mp * Kp * x_bytes     # x re-read per N block
            + (Mp // tm) * Kp * Np * 2                        # W re-read per M block
            + Mp * Np * out_bytes,
        ),
    )(x_p, w_p, b_p)

    if Mp != M or Np != N:
        out_p = out_p[:M, :N]
    return out_p


def _linear_gemm(x_mf, w_fn, b_n, *, out_dtype=None, tm_max=512):
    """(M, F) @ (F, N) + b -> (M, N) with bf16 MXU operands / f32 accumulate."""
    M, F = x_mf.shape
    Fw, N = w_fn.shape
    assert Fw == F, (Fw, F)
    out_dtype = out_dtype or x_mf.dtype

    w_bf = w_fn.astype(jnp.bfloat16)                 # small, read once
    b_2d = b_n.astype(jnp.float32).reshape(1, N)     # f32 bias -> f32 acc

    x_bytes = jnp.dtype(x_mf.dtype).itemsize
    out_bytes = jnp.dtype(out_dtype).itemsize
    gran = 16 if x_bytes == 2 else 8                 # bf16 packs 2 rows/sublane

    w_bytes = F * N * 2 + _round_up(N, 128) * 4
    BUDGET = 12 * 1024 * 1024   # fits v5e's 16 MiB scoped default, v7x's 64 MiB VMEM

    def tile_bytes(tm):
        # double-buffered activation tile + double-buffered output tile
        return 2 * tm * F * x_bytes + 2 * tm * N * out_bytes

    resident = w_bytes <= 4 * 1024 * 1024
    tm = None
    Mp = M
    if resident:
        tm = _choose_tm(M, gran, tm_max)
        if tm is not None and tm < 128 and M > 4 * tm_max:
            tm = None       # one M-pad pass beats thousands of tiny grid steps
        if tm is None:
            tm = tm_max
        Mp = _round_up(M, tm)
        while (w_bytes + tile_bytes(tm) > BUDGET and tm > gran and tm % 2 == 0
               and (tm // 2) % gran == 0 and Mp % (tm // 2) == 0):
            tm //= 2
        if w_bytes + tile_bytes(tm) > BUDGET:
            resident = False

    if not resident:
        return _streamed_call(x_mf, w_bf, b_2d, out_dtype, gran, tm_max)

    # Activations: only padded along M, and only if no aligned divisor exists.
    x_p = x_mf if Mp == M else jnp.pad(x_mf, ((0, Mp - M), (0, 0)))

    out_p = pl.pallas_call(
        _resident_kernel,
        out_shape=jax.ShapeDtypeStruct((Mp, N), out_dtype),
        grid_spec=pltpu.PrefetchScalarGridSpec(
            num_scalar_prefetch=0,
            grid=(Mp // tm,),
            in_specs=[
                pl.BlockSpec((tm, F), lambda i: (i, 0)),   # activations, streamed once
                pl.BlockSpec((F, N), lambda i: (0, 0)),    # W: constant index -> 1 DMA
                pl.BlockSpec((1, N), lambda i: (0, 0)),    # bias: resident
            ],
            out_specs=pl.BlockSpec((tm, N), lambda i: (i, 0)),
        ),
        compiler_params=pltpu.CompilerParams(
            dimension_semantics=("parallel",),
        ),
        cost_estimate=pl.CostEstimate(
            flops=2 * Mp * N * F,
            transcendentals=0,
            bytes_accessed=Mp * F * x_bytes + F * N * 2 + N * 4 + Mp * N * out_bytes,
        ),
    )(x_p, w_bf, b_2d)

    if Mp != M:
        out_p = out_p[:M]
    return out_p


@jax.jit
def time_distributed_forward(x_btf, weight_nf, bias_n):
    """TimeDistributed(Linear): apply the same Linear to every timestep.

    x_btf:     (B, T, F)  -- batch, timesteps, in_features
    weight_nf: (N, F)     -- torch.nn.Linear weight layout
    bias_n:    (N,)
    returns:   (B, T, N)
    """
    B, T, F = x_btf.shape
    N = weight_nf.shape[0]
    x_mf = x_btf.reshape(B * T, F)              # contiguous reshape, no copy
    # One small (N,F)->(F,N) transpose per call; cache weight.T outside the
    # hot path if the same Linear is applied at a high call rate.
    w_fn = jnp.transpose(weight_nf, (1, 0))
    out_mn = _linear_gemm(x_mf, w_fn, bias_n, out_dtype=x_btf.dtype)
    return out_mn.reshape(B, T, N)


if __name__ == "__main__":
    key = jax.random.PRNGKey(0)
    k_x, k_w, k_b = jax.random.split(key, 3)

    B, T, F, N = 2, 8, 32, 32  # batch, timesteps, in_features, out_features

    x = jax.random.normal(k_x, (B, T, F), dtype=jnp.float32)
    # Deterministic synthetic Linear parameters (torch layout: W (N,F), b (N,))
    weight = jax.random.normal(k_w, (N, F), dtype=jnp.float32) * 0.1
    bias = jax.random.normal(k_b, (N,), dtype=jnp.float32) * 0.1

    out = jax.block_until_ready(time_distributed_forward(x, weight, bias))

    # Reference: per-timestep Linear in plain JAX (f32).  Kernel runs the MXU
    # in bf16 with an f32 accumulate, so compare at bf16-appropriate tolerance.
    ref = jnp.einsum("btf,nf->btn", x, weight) + bias
    assert out.shape == (B, T, N)
    assert jnp.allclose(out, ref, atol=2e-2, rtol=2e-2), float(
        jnp.max(jnp.abs(out - ref)))

    print("KERNEL_OK")
</pallas_src>

<mosaic_0001>
module attributes {stable_mosaic.version = 11 : i64} {
  func.func @_resident_kernel(%arg0: i32, %arg1: memref<8x32xf32, #tpu.memory_space<vmem>>, %arg2: memref<32x32xbf16, #tpu.memory_space<vmem>>, %arg3: memref<1x32xf32, #tpu.memory_space<vmem>>, %arg4: memref<8x32xf32, #tpu.memory_space<vmem>>) attributes {dimension_semantics = [#tpu.dimension_semantics<parallel>], iteration_bounds = array<i64: 2>, scalar_prefetch = 0 : i64, scratch_operands = 0 : i64, tpu.core_type = #tpu.core_type<tc>, window_params = [{transform_indices = @transform_0, window_bounds = array<i64: 8, 32>}, {pipeline_mode = #tpu.pipeline_mode<synchronous>, transform_indices = @transform_1, window_bounds = array<i64: 32, 32>}, {pipeline_mode = #tpu.pipeline_mode<synchronous>, transform_indices = @transform_2, window_bounds = array<i64: 1, 32>}, {transform_indices = @transform_3, window_bounds = array<i64: 8, 32>}]} {
    %c0 = arith.constant 0 : index
    %c0_0 = arith.constant 0 : index
    %0 = vector.load %arg1[%c0, %c0_0] : memref<8x32xf32, #tpu.memory_space<vmem>>, vector<8x32xf32>
    %1 = arith.truncf %0 : vector<8x32xf32> to vector<8x32xbf16>
    %c0_1 = arith.constant 0 : index
    %c0_2 = arith.constant 0 : index
    %2 = vector.load %arg2[%c0_1, %c0_2] : memref<32x32xbf16, #tpu.memory_space<vmem>>, vector<32x32xbf16>
    %cst = arith.constant dense<0.000000e+00> : vector<8x32xf32>
    %3 = tpu.matmul %1, %2, %cst {dimension_numbers = #tpu.dot_dimension_numbers<[1], [0], [0], [1], [0, 0, 1, 1], [], []>} : vector<8x32xbf16>, vector<32x32xbf16>, vector<8x32xf32> -> vector<8x32xf32>
    %c0_3 = arith.constant 0 : index
    %c0_4 = arith.constant 0 : index
    %4 = vector.load %arg3[%c0_3, %c0_4] : memref<1x32xf32, #tpu.memory_space<vmem>>, vector<1x32xf32>
    %5 = vector.broadcast %4 : vector<1x32xf32> to vector<8x32xf32>
    %6 = arith.addf %3, %5 : vector<8x32xf32>
    %c0_5 = arith.constant 0 : index
    %c0_6 = arith.constant 0 : index
    %7 = vector.load %arg4[%c0_5, %c0_6] : memref<8x32xf32, #tpu.memory_space<vmem>>, vector<8x32xf32>
    tpu.vector_store %arg4[%c0_5, %c0_6], %6 {strides = array<i32>} : memref<8x32xf32, #tpu.memory_space<vmem>>, vector<8x32xf32>,
    return
  }
  func.func @transform_0(%arg0: i32) -> (i32, i32) {
    %c0_i32 = arith.constant 0 : i32
    %c0_i32_0 = arith.constant 0 : i32
    return %arg0, %c0_i32 : i32, i32
  }
  func.func @transform_1(%arg0: i32) -> (i32, i32) {
    %c0_i32 = arith.constant 0 : i32
    %c0_i32_0 = arith.constant 0 : i32
    %c0_i32_1 = arith.constant 0 : i32
    return %c0_i32, %c0_i32_0 : i32, i32
  }
  func.func @transform_2(%arg0: i32) -> (i32, i32) {
    %c0_i32 = arith.constant 0 : i32
    %c0_i32_0 = arith.constant 0 : i32
    %c0_i32_1 = arith.constant 0 : i32
    return %c0_i32, %c0_i32_0 : i32, i32
  }
  func.func @transform_3(%arg0: i32) -> (i32, i32) {
    %c0_i32 = arith.constant 0 : i32
    %c0_i32_0 = arith.constant 0 : i32
    return %arg0, %c0_i32 : i32, i32
  }
}

</mosaic_0001>

<bundles_post_ra>
// kernel: time_distributed_forward.1
= control target key start
LH: loop header
LB: loop body
LE: loop exit
PB: predicated region body
PF: predicated region fallthrough
CT: control target
= control target key end

     0   :  { %8 = vsyncpa [#allocation3], 0  ;;  %s576_s0 = inlined_call_operand.vmem [shape: f32[16,32], index: 0, kind: input, shape index: {}]   ;;  %s577_s1 = inlined_call_operand.vmem [shape: bf16[32,32], index: 1, kind: input, shape index: {}]   ;;  %s578_s2 = inlined_call_operand.vmem [shape: f32[1,32], index: 2, kind: input, shape index: {}]   ;;  %s579_s3 = inlined_call_operand.hbm [shape: f32[16,32], index: 3, kind: output, shape index: {}]  }
   0x1   :  { %10 = vsyncpa [#allocation3 + $0x1], 0  ;;  %s465_s12 = smov 0   ;;  %s467_s13 = smov 0  }
   0x2   :  { %s469_s14 = smov 0   ;;  %s471_s15 = smov 0  }
   0x3 LB: > { %s486_s16 = sadd.s32 4294967295, %s440_s15   ;;  %s310_s17 = sadd.s32 4294967294, %s440_s15   ;;  %s440_s15 = sphi %s471_s15, %s585_s15   ;;  %s436_s14 = sphi %s469_s14, %s584_s14   ;;  %s432_s13 = sphi %s467_s13, %s583_s13   ;;  %s428_s12 = sphi %s465_s12, %s582_s12  }
   0x4   : > { %s490_s18 = sadd.s32 1, %s440_s15   ;;  %s91_s19 = sadd.s32 1, %s436_s14 }
   0x5   : > { %s88_s20 = ssub.s32 %s440_s15, %s490_s18  ;;  %p101_p0 = scmp.ne.s32.totalorder %s436_s14, %s432_s13 }
   0x6   : > { %p89_p1 = scmp.eq.s32.totalorder %s88_s20, 0  ;;  %p102_p2 = scmp.eq.s32.totalorder %s486_s16, 1 }
   0x7   : > { %p107_p3 = scmp.ne.s32.totalorder %s432_s13, %s428_s12  ;;  %p108_p4 = scmp.eq.s32.totalorder %s310_s17, 1 }
   0x8   : > { %s501_s21 = scalar_select %p89_p1, %s436_s14, %s91_s19  }
   0x9   : > { %p503_p5 = por %p102_p2, %p101_p0  ;;  %p507_p6 = por %p108_p4, %p107_p3 }
   0xa   : > { %p313_p7 = scmp.ge.s32.totalorder %s440_s15, 1  ;;  %p139_p8 = scmp.lt.s32.totalorder %s440_s15, 3 }
   0xc   : > { %p140_p9 = pnand %p313_p7, %p139_p8 }
   0xd   : > { %v376_v0 = vld [vmem:[%s577_s1] sm:$0xff] (!%p140_p9)   ;;  %v442_v1 = vmov (!%p140_p9), 0.0   ;;  %v377_v2 = vld [vmem:[%s577_s1 + $0x8] sm:$0xff] (!%p140_p9)   ;;  %vm443_vm0 = vmmov (!%p140_p9), 0   ;;  %p162_p10 = scmp.lt.s32.totalorder (!%p140_p9), %s486_s16, 1  ;;  %vm192_vm1 = vcmask (!%p140_p9), 261120  }
   0xe   : > { %143 = sbr.rel (%p140_p9) target bundleno = 256 (0x100), region = 32  ;;  %327 = vmatprep.subr.bf16.mxu0 (!%p140_p9), %v442_v1  ;;  %331 = vmatprep.mubr.msk.bf16.mxu0 (!%p140_p9), %vm443_vm0, %v442_v1  ;;  %s159_s6 = sand.u32 (!%p140_p9), 1, %s432_s13   ;;  %v316_v5 = vld [vmem:[%s578_s2] ss:$0 sm:$0xff] (!%p140_p9) }
   0xf   : > { %328 = vmatpush3.bf16.msra.mxu0 (!%p140_p9), %v376_v0  ;;  %s314_s7 = sshll.u32 (!%p140_p9), %s159_s6, 3  ;;  %s321_s10 = sshll.u32 (!%p140_p9), %s486_s16, 7 }
  0x10   : > { %329 = vmatprep.subr.bf16.mxu0 (!%p140_p9), %v442_v1  ;;  %s161_s11 = scalar_lea.vmem (!%p140_p9), [#allocation2], %s314_s7  ;;  %s533_s24 = scalar_lea.hbm (!%p140_p9), %s579_s3, %s321_s10 }
  0x11   : > { %s251_s17 = sshll.u32 (!%p140_p9), %s161_s11, 4  ;;  %s444_s26 = smov (!%p140_p9), [#allocation2]   ;;  %s535_s17 = int_to_ptr.vmem [resolvable:$true] %s251_s17 }
  0x12   : > { %s378_s25 = scalar_lea.vmem (!%p140_p9), %s535_s17, 128  ;;  %s382_s27 = sshll.u32 (!%p140_p9), %s444_s26, 4  ;;  %s383_s27 = int_to_ptr.vmem [resolvable:$false] %s382_s27 }
  0x13   : > { %330 = vmatpush3.bf16.msra.mxu0 (!%p140_p9), %v377_v2  ;;  %p379_p11 = scmp.ne.s32.totalorder (!%p140_p9), %s535_s17, %s378_s25  ;;  %p385_p0 = scmp.lt.s32.totalorder (!%p140_p9), %s535_s17, %s383_s27 }
  0x15   : > { %s163_s28 = scalar_select %p162_p10, %s486_s16, 1 }
  0x16   : > { %s238_s16 = scalar_lea.sflag [#allocation3], %s159_s6  ;;  %p380_p12 = pnand %p379_p11, %p503_p5 }
  0x17   : > { %s315_s29 = sshll.u32 %s163_s28, 3  ;;  %s384_s28 = scalar_lea.vmem %s383_s27, 256 }
  0x18   : > { %s165_s5 = scalar_lea.vmem %s576_s0, %s315_s29  ;;  %p381_p13 = pneg %p380_p12 }
  0x19   : > { %v167_v3 = vld [vmem:[%s165_s5] sm:$0xff]  ;;  %p386_p1 = scmp.lt.s32.totalorder %s384_s28, %s378_s25 }
  0x1a   : > { %v168_v4 = vpack.c.bf16 %v167_v3, %v167_v3 }
  0x1b   : > { %p387_p2 = por %p386_p1, %p385_p0 }
  0x1c   : > { %332 = vmatmul.mubr.msk.bf16.vlgmr.msra.gmra.mrb[0].mxu0 %vm192_vm1, %v168_v4 }
  0x1d   : > { %p388_p3 = pnand %p387_p2, %p381_p13 }
  0xef   : > { %v230_v6 = vpop.f32.mrb[0].mxu0 }
  0xf0   : > { %v231_v7 = vadd.f32 %v316_v5, %v230_v6  ;;  %v333_v8 = vpop.f32.mrb[1].mxu0 }
  0xf1   : > { %v233_v9 = vpop.f32.mrb[2].mxu0 }
  0xf2   : > { %v334_v10 = vpop.f32.mrb[3].mxu0  ;;  %236 = vst.msk [vmem:[%s161_s11] sm:$0xff] %vm192_vm1, %v231_v7 }
  0xf3   : > { %391 = shalt.err (!%p388_p3)
}
  0xf4   : > { %s392_s29 = scalar_lea.hbm %s533_s24, 128  ;;  %s396_s5 = scalar_lea.hbm %s579_s3, 256 }
  0xf5   : > { %p393_p4 = scmp.ne.s32.totalorder %s533_s24, %s392_s29  ;;  %p397_p9 = scmp.lt.u32.totalorder %s533_s24, %s579_s3 }
  0xf6   : > { %p398_p10 = scmp.lt.u32.totalorder %s396_s5, %s392_s29  ;;  %p400_p12 = scmp.lt.u32.totalorder %s392_s29, %s533_s24 }
  0xf7   : > { %p394_p7 = pnand %p393_p4, %p503_p5 }
  0xf8   : > { %p399_p11 = por %p398_p10, %p397_p9 }
  0xf9   : > { %p395_p8 = pneg %p394_p7 }
  0xfa   : > { %p401_p13 = por %p400_p12, %p399_p11 }
  0xfc   : > { %p402_p0 = pnand %p401_p13, %p395_p8 }
  0xfe   : > { %405 = shalt.err (!%p402_p0)
}
  0xff   : > { %335 = dma.vmem_to_hbm [thread:$0]  (%p503_p5), %s535_s17, 128, %s533_s24, %s238_s16  }
 0x100 PF: > { %p341_p1 = scmp.ge.s32.totalorder %s440_s15, 2  ;;  %s263_s8 = sand.u32 1, %s428_s12  }
 0x101   : > { %s264_s9 = scalar_lea.sflag [#allocation3], %s263_s8 }
 0x102   : > { %p338_p2 = pnand %p341_p1, %p507_p6 }
 0x104   : > { %423 = dma.done.wait (!%p338_p2), %s264_s9, 128  }
 0x105   : > { %425 = vsyncadd (!%p338_p2), %s264_s9, 4294967168  ;;  %p13_p3 = scmp.ge.s32.totalorder %s490_s18, 4   ;;  %s582_s12 = smov %s432_s13 }
 0x106   : > { %s583_s13 = smov %s436_s14  ;;  %s584_s14 = smov %s501_s21 }
 0x107   : > { %s585_s15 = smov %s490_s18  ;;  %15 = sbr.rel (!%p13_p3) target bundleno = 3 (0x3), region = 67 }
 0x10e   :  { %269 = vsyncpa [#allocation3], 1 }
 0x10f   :  { %271 = vsyncpa [#allocation3 + $0x1], 1 }

</bundles_post_ra>
